<compile_context>
chip_gen: v7x
topology: tpu7x:2x2x1
jax: 0.10.0
libtpu: 0.0.40
codegen_flags: <defaults>
</compile_context>

<pallas_src>
import functools

import jax
import jax.numpy as jnp
import numpy as np
from jax.experimental import pallas as pl
from jax.experimental.pallas import tpu as pltpu
from jax.scipy.special import logsumexp

TEMPERATURE = 0.05
COS_EPS = 1e-8


def _pair_inbatch_softmax_loss_kernel(text_ids_ref, pos_ids_ref, table_ref,
                                      loss_ref, *, batch, temperature):
    b_pad, seq_len = text_ids_ref.shape
    vocab, _ = table_ref.shape

    # ---- build per-row token-count matrices (B_pad, V) on the VPU ---------------
    v_iota = jax.lax.broadcasted_iota(jnp.int32, (b_pad, vocab), 1)
    counts_t = jnp.zeros((b_pad, vocab), jnp.float32)
    counts_p = jnp.zeros((b_pad, vocab), jnp.float32)
    # TODO(synk): for large S, chunk this with lax.fori_loop(..., unroll=True)
    # (a static unroll is fine at demo sequence lengths).
    for s in range(seq_len):
        tok_t = text_ids_ref[:, pl.ds(s, 1)]          # (B_pad, 1) int32
        tok_p = pos_ids_ref[:, pl.ds(s, 1)]
        counts_t = counts_t + (tok_t == v_iota).astype(jnp.float32)
        counts_p = counts_p + (tok_p == v_iota).astype(jnp.float32)

    # ---- pooled token-embedding sums via the MXU ---------------------------------
    table = table_ref[...].astype(jnp.float32)
    dn_pool = (((1,), (0,)), ((), ()))
    sum_t = jax.lax.dot_general(counts_t, table, dn_pool,
                                preferred_element_type=jnp.float32,
                                precision=jax.lax.Precision.HIGHEST)  # (B_pad, D)
    sum_p = jax.lax.dot_general(counts_p, table, dn_pool,
                                preferred_element_type=jnp.float32,
                                precision=jax.lax.Precision.HIGHEST)  # (B_pad, D)

    # ---- cosine similarity / temperature -----------------------------------------
    # Cosine is scale-invariant, so normalize the sums directly (mean = sum / S);
    # the squared-norm clamp is scaled by S^2 to preserve the clamp semantics.
    # TODO(synk): this per-vector clamp is not bit-identical to the reference's
    # clamp on the *product* of norms when an embedding is (near-)zero.
    inv_temp = 1.0 / temperature
    thr = COS_EPS * float(seq_len) * float(seq_len)
    t_scale = jax.lax.rsqrt(
        jnp.maximum(jnp.sum(sum_t * sum_t, axis=1, keepdims=True), thr))
    p_scale = jax.lax.rsqrt(
        jnp.maximum(jnp.sum(sum_p * sum_p, axis=1, keepdims=True), thr))
    t_n = sum_t * (t_scale * inv_temp)   # fold 1/temperature into one operand
    p_n = sum_p * p_scale

    sim = jax.lax.dot_general(t_n, p_n, (((1,), (1,)), ((), ())),
                              preferred_element_type=jnp.float32,
                              precision=jax.lax.Precision.HIGHEST)   # (B_pad, B_pad)
    diag = jnp.sum(t_n * p_n, axis=1, keepdims=True)                 # (B_pad, 1)

    # ---- softmax cross-entropy, labels = arange(batch), padding masked out -------
    col = jax.lax.broadcasted_iota(jnp.int32, (b_pad, b_pad), 1)
    sim = jnp.where(col < batch, sim, jnp.float32(-1e30))            # mask pad cols
    row_max = jnp.max(sim, axis=1, keepdims=True)
    lse = row_max + jnp.log(jnp.sum(jnp.exp(sim - row_max), axis=1, keepdims=True))
    per_example = lse - diag                                         # (B_pad, 1)
    row = jax.lax.broadcasted_iota(jnp.int32, (b_pad, 1), 0)
    per_example = jnp.where(row < batch, per_example, 0.0)           # mask pad rows
    loss_ref[...] = jnp.sum(per_example, axis=0, keepdims=True) * (1.0 / batch)


def embedder_pair_inbatch_neg_train_forward(text_ids, text_pos_ids,
                                            embedding_table,
                                            temperature: float = TEMPERATURE):
    """JAX/Pallas equivalent of EmbedderForPairInBatchNegTrain.forward
    (loss_type='softmax'). Returns {'loss': scalar}."""
    B, S = text_ids.shape
    V, D = embedding_table.shape
    assert text_pos_ids.shape == (B, S)
    assert D % 128 == 0, "D should be lane-aligned (multiple of 128)"

    # Pad the batch to a multiple of 8 sublanes so the pooling / similarity matmuls
    # are tile-shaped; padded rows are masked out of the loss inside the kernel.
    # TODO(synk): at production batch sizes align B to 128 (v5e) / 256 (v6e, v7x)
    # MXU pass sizes rather than just 8.
    b_pad = max(8, -(-B // 8) * 8)
    if b_pad != B:
        pad = ((0, b_pad - B), (0, 0))
        text_ids = jnp.pad(text_ids, pad)
        text_pos_ids = jnp.pad(text_pos_ids, pad)

    kernel = functools.partial(_pair_inbatch_softmax_loss_kernel,
                               batch=B, temperature=float(temperature))

    # Advisory cost estimate: two pooling matmuls + (B,B) cosine matmul + softmax.
    flops = 2 * (2 * b_pad * V * D) + 2 * b_pad * b_pad * D + 12 * b_pad * b_pad
    transcendentals = b_pad * b_pad + 3 * b_pad
    bytes_accessed = (V * D * embedding_table.dtype.itemsize
                      + 2 * b_pad * S * 4 + 4)

    # Single kernel invocation (no grid): ids + table live whole-array in VMEM, so
    # there is no per-step pipeline overhead and the constant table is not
    # double-buffered.
    loss = pl.pallas_call(
        kernel,
        out_shape=jax.ShapeDtypeStruct((1, 1), jnp.float32),
        in_specs=[
            pl.BlockSpec(memory_space=pltpu.MemorySpace.VMEM),   # text_ids
            pl.BlockSpec(memory_space=pltpu.MemorySpace.VMEM),   # text_pos_ids
            pl.BlockSpec(memory_space=pltpu.MemorySpace.VMEM),   # embedding table
        ],
        out_specs=pl.BlockSpec(memory_space=pltpu.MemorySpace.VMEM),
        compiler_params=pltpu.CompilerParams(
            # Tiny footprint here; raise toward ~100 MiB on v5e/v6e (128 MiB VMEM)
            # for large resident tables, keep <= ~60 MiB on v7x (64 MiB VMEM).
            vmem_limit_bytes=32 * 1024 * 1024,
        ),
        cost_estimate=pl.CostEstimate(flops=flops,
                                      transcendentals=transcendentals,
                                      bytes_accessed=bytes_accessed),
    )(text_ids.astype(jnp.int32), text_pos_ids.astype(jnp.int32), embedding_table)

    return {'loss': loss[0, 0]}


def _reference_forward(text_ids, text_pos_ids, embedding_table,
                       temperature=TEMPERATURE):
    """Pure-JAX reference mirroring the PyTorch module."""
    t = jnp.mean(embedding_table[text_ids], axis=1)
    p = jnp.mean(embedding_table[text_pos_ids], axis=1)
    dots = jax.lax.dot_general(t, p, (((1,), (1,)), ((), ())),
                               precision=jax.lax.Precision.HIGHEST)
    denom = jnp.maximum(jnp.linalg.norm(t, axis=1, keepdims=True)
                        * jnp.linalg.norm(p, axis=1, keepdims=True).T, COS_EPS)
    sim = dots / denom / temperature
    lse = logsumexp(sim, axis=1)
    diag = jnp.diagonal(sim)
    return jnp.mean(lse - diag)


if __name__ == "__main__":
    VOCAB, B, S, D = 64, 4, 16, 128

    key = jax.random.PRNGKey(0)
    k_emb, k_text, k_pos = jax.random.split(key, 3)

    # Deterministic "parameters": the synthetic embedder's embedding table.
    embedding_table = 0.02 * jax.random.normal(k_emb, (VOCAB, D), jnp.float32)

    text_ids = jax.random.randint(k_text, (B, S), 0, VOCAB, dtype=jnp.int32)
    text_pos_ids = jax.random.randint(k_pos, (B, S), 0, VOCAB, dtype=jnp.int32)

    out = embedder_pair_inbatch_neg_train_forward(text_ids, text_pos_ids,
                                                  embedding_table)
    loss = jax.block_until_ready(out['loss'])

    ref = _reference_forward(text_ids, text_pos_ids, embedding_table)
    assert np.allclose(np.asarray(loss), np.asarray(ref), rtol=1e-3, atol=1e-4), \
        (loss, ref)

    print("KERNEL_OK")
</pallas_src>

<mosaic_0001>
module attributes {stable_mosaic.version = 11 : i64} {
  func.func @_pair_inbatch_softmax_loss_kernel(%arg0: memref<8x16xi32, #tpu.memory_space<vmem>>, %arg1: memref<8x16xi32, #tpu.memory_space<vmem>>, %arg2: memref<64x128xf32, #tpu.memory_space<vmem>>, %arg3: memref<1x1xf32, #tpu.memory_space<vmem>>) attributes {dimension_semantics = [], scalar_prefetch = 0 : i64, scratch_operands = 0 : i64, tpu.core_type = #tpu.core_type<tc>} {
    %0 = tpu.iota {dimensions = array<i32: 1>} : vector<8x64xi32>
    %cst = arith.constant 0.000000e+00 : f32
    %1 = vector.broadcast %cst : f32 to vector<8x64xf32>
    %cst_0 = arith.constant 0.000000e+00 : f32
    %2 = vector.broadcast %cst_0 : f32 to vector<8x64xf32>
    %c0 = arith.constant 0 : index
    %c0_1 = arith.constant 0 : index
    %3 = vector.load %arg0[%c0, %c0_1] : memref<8x16xi32, #tpu.memory_space<vmem>>, vector<8x1xi32>
    %c0_2 = arith.constant 0 : index
    %c0_3 = arith.constant 0 : index
    %4 = vector.load %arg1[%c0_2, %c0_3] : memref<8x16xi32, #tpu.memory_space<vmem>>, vector<8x1xi32>
    %5 = vector.broadcast %3 : vector<8x1xi32> to vector<8x64xi32>
    %6 = arith.cmpi eq, %5, %0 : vector<8x64xi32>
    %7 = arith.extui %6 : vector<8x64xi1> to vector<8x64xi32>
    %8 = arith.sitofp %7 : vector<8x64xi32> to vector<8x64xf32>
    %9 = arith.addf %1, %8 : vector<8x64xf32>
    %10 = vector.broadcast %4 : vector<8x1xi32> to vector<8x64xi32>
    %11 = arith.cmpi eq, %10, %0 : vector<8x64xi32>
    %12 = arith.extui %11 : vector<8x64xi1> to vector<8x64xi32>
    %13 = arith.sitofp %12 : vector<8x64xi32> to vector<8x64xf32>
    %14 = arith.addf %2, %13 : vector<8x64xf32>
    %c0_4 = arith.constant 0 : index
    %c1 = arith.constant 1 : index
    %15 = vector.load %arg0[%c0_4, %c1] : memref<8x16xi32, #tpu.memory_space<vmem>>, vector<8x1xi32>
    %c0_5 = arith.constant 0 : index
    %c1_6 = arith.constant 1 : index
    %16 = vector.load %arg1[%c0_5, %c1_6] : memref<8x16xi32, #tpu.memory_space<vmem>>, vector<8x1xi32>
    %17 = vector.broadcast %15 : vector<8x1xi32> to vector<8x64xi32>
    %18 = arith.cmpi eq, %17, %0 : vector<8x64xi32>
    %19 = arith.extui %18 : vector<8x64xi1> to vector<8x64xi32>
    %20 = arith.sitofp %19 : vector<8x64xi32> to vector<8x64xf32>
    %21 = arith.addf %9, %20 : vector<8x64xf32>
    %22 = vector.broadcast %16 : vector<8x1xi32> to vector<8x64xi32>
    %23 = arith.cmpi eq, %22, %0 : vector<8x64xi32>
    %24 = arith.extui %23 : vector<8x64xi1> to vector<8x64xi32>
    %25 = arith.sitofp %24 : vector<8x64xi32> to vector<8x64xf32>
    %26 = arith.addf %14, %25 : vector<8x64xf32>
    %c0_7 = arith.constant 0 : index
    %c2 = arith.constant 2 : index
    %27 = vector.load %arg0[%c0_7, %c2] : memref<8x16xi32, #tpu.memory_space<vmem>>, vector<8x1xi32>
    %c0_8 = arith.constant 0 : index
    %c2_9 = arith.constant 2 : index
    %28 = vector.load %arg1[%c0_8, %c2_9] : memref<8x16xi32, #tpu.memory_space<vmem>>, vector<8x1xi32>
    %29 = vector.broadcast %27 : vector<8x1xi32> to vector<8x64xi32>
    %30 = arith.cmpi eq, %29, %0 : vector<8x64xi32>
    %31 = arith.extui %30 : vector<8x64xi1> to vector<8x64xi32>
    %32 = arith.sitofp %31 : vector<8x64xi32> to vector<8x64xf32>
    %33 = arith.addf %21, %32 : vector<8x64xf32>
    %34 = vector.broadcast %28 : vector<8x1xi32> to vector<8x64xi32>
    %35 = arith.cmpi eq, %34, %0 : vector<8x64xi32>
    %36 = arith.extui %35 : vector<8x64xi1> to vector<8x64xi32>
    %37 = arith.sitofp %36 : vector<8x64xi32> to vector<8x64xf32>
    %38 = arith.addf %26, %37 : vector<8x64xf32>
    %c0_10 = arith.constant 0 : index
    %c3 = arith.constant 3 : index
    %39 = vector.load %arg0[%c0_10, %c3] : memref<8x16xi32, #tpu.memory_space<vmem>>, vector<8x1xi32>
    %c0_11 = arith.constant 0 : index
    %c3_12 = arith.constant 3 : index
    %40 = vector.load %arg1[%c0_11, %c3_12] : memref<8x16xi32, #tpu.memory_space<vmem>>, vector<8x1xi32>
    %41 = vector.broadcast %39 : vector<8x1xi32> to vector<8x64xi32>
    %42 = arith.cmpi eq, %41, %0 : vector<8x64xi32>
    %43 = arith.extui %42 : vector<8x64xi1> to vector<8x64xi32>
    %44 = arith.sitofp %43 : vector<8x64xi32> to vector<8x64xf32>
    %45 = arith.addf %33, %44 : vector<8x64xf32>
    %46 = vector.broadcast %40 : vector<8x1xi32> to vector<8x64xi32>
    %47 = arith.cmpi eq, %46, %0 : vector<8x64xi32>
    %48 = arith.extui %47 : vector<8x64xi1> to vector<8x64xi32>
    %49 = arith.sitofp %48 : vector<8x64xi32> to vector<8x64xf32>
    %50 = arith.addf %38, %49 : vector<8x64xf32>
    %c0_13 = arith.constant 0 : index
    %c4 = arith.constant 4 : index
    %51 = vector.load %arg0[%c0_13, %c4] : memref<8x16xi32, #tpu.memory_space<vmem>>, vector<8x1xi32>
    %c0_14 = arith.constant 0 : index
    %c4_15 = arith.constant 4 : index
    %52 = vector.load %arg1[%c0_14, %c4_15] : memref<8x16xi32, #tpu.memory_space<vmem>>, vector<8x1xi32>
    %53 = vector.broadcast %51 : vector<8x1xi32> to vector<8x64xi32>
    %54 = arith.cmpi eq, %53, %0 : vector<8x64xi32>
    %55 = arith.extui %54 : vector<8x64xi1> to vector<8x64xi32>
    %56 = arith.sitofp %55 : vector<8x64xi32> to vector<8x64xf32>
    %57 = arith.addf %45, %56 : vector<8x64xf32>
    %58 = vector.broadcast %52 : vector<8x1xi32> to vector<8x64xi32>
    %59 = arith.cmpi eq, %58, %0 : vector<8x64xi32>
    %60 = arith.extui %59 : vector<8x64xi1> to vector<8x64xi32>
    %61 = arith.sitofp %60 : vector<8x64xi32> to vector<8x64xf32>
    %62 = arith.addf %50, %61 : vector<8x64xf32>
    %c0_16 = arith.constant 0 : index
    %c5 = arith.constant 5 : index
    %63 = vector.load %arg0[%c0_16, %c5] : memref<8x16xi32, #tpu.memory_space<vmem>>, vector<8x1xi32>
    %c0_17 = arith.constant 0 : index
    %c5_18 = arith.constant 5 : index
    %64 = vector.load %arg1[%c0_17, %c5_18] : memref<8x16xi32, #tpu.memory_space<vmem>>, vector<8x1xi32>
    %65 = vector.broadcast %63 : vector<8x1xi32> to vector<8x64xi32>
    %66 = arith.cmpi eq, %65, %0 : vector<8x64xi32>
    %67 = arith.extui %66 : vector<8x64xi1> to vector<8x64xi32>
    %68 = arith.sitofp %67 : vector<8x64xi32> to vector<8x64xf32>
    %69 = arith.addf %57, %68 : vector<8x64xf32>
    %70 = vector.broadcast %64 : vector<8x1xi32> to vector<8x64xi32>
    %71 = arith.cmpi eq, %70, %0 : vector<8x64xi32>
    %72 = arith.extui %71 : vector<8x64xi1> to vector<8x64xi32>
    %73 = arith.sitofp %72 : vector<8x64xi32> to vector<8x64xf32>
    %74 = arith.addf %62, %73 : vector<8x64xf32>
    %c0_19 = arith.constant 0 : index
    %c6 = arith.constant 6 : index
    %75 = vector.load %arg0[%c0_19, %c6] : memref<8x16xi32, #tpu.memory_space<vmem>>, vector<8x1xi32>
    %c0_20 = arith.constant 0 : index
    %c6_21 = arith.constant 6 : index
    %76 = vector.load %arg1[%c0_20, %c6_21] : memref<8x16xi32, #tpu.memory_space<vmem>>, vector<8x1xi32>
    %77 = vector.broadcast %75 : vector<8x1xi32> to vector<8x64xi32>
    %78 = arith.cmpi eq, %77, %0 : vector<8x64xi32>
    %79 = arith.extui %78 : vector<8x64xi1> to vector<8x64xi32>
    %80 = arith.sitofp %79 : vector<8x64xi32> to vector<8x64xf32>
    %81 = arith.addf %69, %80 : vector<8x64xf32>
    %82 = vector.broadcast %76 : vector<8x1xi32> to vector<8x64xi32>
    %83 = arith.cmpi eq, %82, %0 : vector<8x64xi32>
    %84 = arith.extui %83 : vector<8x64xi1> to vector<8x64xi32>
    %85 = arith.sitofp %84 : vector<8x64xi32> to vector<8x64xf32>
    %86 = arith.addf %74, %85 : vector<8x64xf32>
    %c0_22 = arith.constant 0 : index
    %c7 = arith.constant 7 : index
    %87 = vector.load %arg0[%c0_22, %c7] : memref<8x16xi32, #tpu.memory_space<vmem>>, vector<8x1xi32>
    %c0_23 = arith.constant 0 : index
    %c7_24 = arith.constant 7 : index
    %88 = vector.load %arg1[%c0_23, %c7_24] : memref<8x16xi32, #tpu.memory_space<vmem>>, vector<8x1xi32>
    %89 = vector.broadcast %87 : vector<8x1xi32> to vector<8x64xi32>
    %90 = arith.cmpi eq, %89, %0 : vector<8x64xi32>
    %91 = arith.extui %90 : vector<8x64xi1> to vector<8x64xi32>
    %92 = arith.sitofp %91 : vector<8x64xi32> to vector<8x64xf32>
    %93 = arith.addf %81, %92 : vector<8x64xf32>
    %94 = vector.broadcast %88 : vector<8x1xi32> to vector<8x64xi32>
    %95 = arith.cmpi eq, %94, %0 : vector<8x64xi32>
    %96 = arith.extui %95 : vector<8x64xi1> to vector<8x64xi32>
    %97 = arith.sitofp %96 : vector<8x64xi32> to vector<8x64xf32>
    %98 = arith.addf %86, %97 : vector<8x64xf32>
    %c0_25 = arith.constant 0 : index
    %c8 = arith.constant 8 : index
    %99 = vector.load %arg0[%c0_25, %c8] : memref<8x16xi32, #tpu.memory_space<vmem>>, vector<8x1xi32>
    %c0_26 = arith.constant 0 : index
    %c8_27 = arith.constant 8 : index
    %100 = vector.load %arg1[%c0_26, %c8_27] : memref<8x16xi32, #tpu.memory_space<vmem>>, vector<8x1xi32>
    %101 = vector.broadcast %99 : vector<8x1xi32> to vector<8x64xi32>
    %102 = arith.cmpi eq, %101, %0 : vector<8x64xi32>
    %103 = arith.extui %102 : vector<8x64xi1> to vector<8x64xi32>
    %104 = arith.sitofp %103 : vector<8x64xi32> to vector<8x64xf32>
    %105 = arith.addf %93, %104 : vector<8x64xf32>
    %106 = vector.broadcast %100 : vector<8x1xi32> to vector<8x64xi32>
    %107 = arith.cmpi eq, %106, %0 : vector<8x64xi32>
    %108 = arith.extui %107 : vector<8x64xi1> to vector<8x64xi32>
    %109 = arith.sitofp %108 : vector<8x64xi32> to vector<8x64xf32>
    %110 = arith.addf %98, %109 : vector<8x64xf32>
    %c0_28 = arith.constant 0 : index
    %c9 = arith.constant 9 : index
    %111 = vector.load %arg0[%c0_28, %c9] : memref<8x16xi32, #tpu.memory_space<vmem>>, vector<8x1xi32>
    %c0_29 = arith.constant 0 : index
    %c9_30 = arith.constant 9 : index
    %112 = vector.load %arg1[%c0_29, %c9_30] : memref<8x16xi32, #tpu.memory_space<vmem>>, vector<8x1xi32>
    %113 = vector.broadcast %111 : vector<8x1xi32> to vector<8x64xi32>
    %114 = arith.cmpi eq, %113, %0 : vector<8x64xi32>
    %115 = arith.extui %114 : vector<8x64xi1> to vector<8x64xi32>
    %116 = arith.sitofp %115 : vector<8x64xi32> to vector<8x64xf32>
    %117 = arith.addf %105, %116 : vector<8x64xf32>
    %118 = vector.broadcast %112 : vector<8x1xi32> to vector<8x64xi32>
    %119 = arith.cmpi eq, %118, %0 : vector<8x64xi32>
    %120 = arith.extui %119 : vector<8x64xi1> to vector<8x64xi32>
    %121 = arith.sitofp %120 : vector<8x64xi32> to vector<8x64xf32>
    %122 = arith.addf %110, %121 : vector<8x64xf32>
    %c0_31 = arith.constant 0 : index
    %c10 = arith.constant 10 : index
    %123 = vector.load %arg0[%c0_31, %c10] : memref<8x16xi32, #tpu.memory_space<vmem>>, vector<8x1xi32>
    %c0_32 = arith.constant 0 : index
    %c10_33 = arith.constant 10 : index
    %124 = vector.load %arg1[%c0_32, %c10_33] : memref<8x16xi32, #tpu.memory_space<vmem>>, vector<8x1xi32>
    %125 = vector.broadcast %123 : vector<8x1xi32> to vector<8x64xi32>
    %126 = arith.cmpi eq, %125, %0 : vector<8x64xi32>
    %127 = arith.extui %126 : vector<8x64xi1> to vector<8x64xi32>
    %128 = arith.sitofp %127 : vector<8x64xi32> to vector<8x64xf32>
    %129 = arith.addf %117, %128 : vector<8x64xf32>
    %130 = vector.broadcast %124 : vector<8x1xi32> to vector<8x64xi32>
    %131 = arith.cmpi eq, %130, %0 : vector<8x64xi32>
    %132 = arith.extui %131 : vector<8x64xi1> to vector<8x64xi32>
    %133 = arith.sitofp %132 : vector<8x64xi32> to vector<8x64xf32>
    %134 = arith.addf %122, %133 : vector<8x64xf32>
    %c0_34 = arith.constant 0 : index
    %c11 = arith.constant 11 : index
    %135 = vector.load %arg0[%c0_34, %c11] : memref<8x16xi32, #tpu.memory_space<vmem>>, vector<8x1xi32>
    %c0_35 = arith.constant 0 : index
    %c11_36 = arith.constant 11 : index
    %136 = vector.load %arg1[%c0_35, %c11_36] : memref<8x16xi32, #tpu.memory_space<vmem>>, vector<8x1xi32>
    %137 = vector.broadcast %135 : vector<8x1xi32> to vector<8x64xi32>
    %138 = arith.cmpi eq, %137, %0 : vector<8x64xi32>
    %139 = arith.extui %138 : vector<8x64xi1> to vector<8x64xi32>
    %140 = arith.sitofp %139 : vector<8x64xi32> to vector<8x64xf32>
    %141 = arith.addf %129, %140 : vector<8x64xf32>
    %142 = vector.broadcast %136 : vector<8x1xi32> to vector<8x64xi32>
    %143 = arith.cmpi eq, %142, %0 : vector<8x64xi32>
    %144 = arith.extui %143 : vector<8x64xi1> to vector<8x64xi32>
    %145 = arith.sitofp %144 : vector<8x64xi32> to vector<8x64xf32>
    %146 = arith.addf %134, %145 : vector<8x64xf32>
    %c0_37 = arith.constant 0 : index
    %c12 = arith.constant 12 : index
    %147 = vector.load %arg0[%c0_37, %c12] : memref<8x16xi32, #tpu.memory_space<vmem>>, vector<8x1xi32>
    %c0_38 = arith.constant 0 : index
    %c12_39 = arith.constant 12 : index
    %148 = vector.load %arg1[%c0_38, %c12_39] : memref<8x16xi32, #tpu.memory_space<vmem>>, vector<8x1xi32>
    %149 = vector.broadcast %147 : vector<8x1xi32> to vector<8x64xi32>
    %150 = arith.cmpi eq, %149, %0 : vector<8x64xi32>
    %151 = arith.extui %150 : vector<8x64xi1> to vector<8x64xi32>
    %152 = arith.sitofp %151 : vector<8x64xi32> to vector<8x64xf32>
    %153 = arith.addf %141, %152 : vector<8x64xf32>
    %154 = vector.broadcast %148 : vector<8x1xi32> to vector<8x64xi32>
    %155 = arith.cmpi eq, %154, %0 : vector<8x64xi32>
    %156 = arith.extui %155 : vector<8x64xi1> to vector<8x64xi32>
    %157 = arith.sitofp %156 : vector<8x64xi32> to vector<8x64xf32>
    %158 = arith.addf %146, %157 : vector<8x64xf32>
    %c0_40 = arith.constant 0 : index
    %c13 = arith.constant 13 : index
    %159 = vector.load %arg0[%c0_40, %c13] : memref<8x16xi32, #tpu.memory_space<vmem>>, vector<8x1xi32>
    %c0_41 = arith.constant 0 : index
    %c13_42 = arith.constant 13 : index
    %160 = vector.load %arg1[%c0_41, %c13_42] : memref<8x16xi32, #tpu.memory_space<vmem>>, vector<8x1xi32>
    %161 = vector.broadcast %159 : vector<8x1xi32> to vector<8x64xi32>
    %162 = arith.cmpi eq, %161, %0 : vector<8x64xi32>
    %163 = arith.extui %162 : vector<8x64xi1> to vector<8x64xi32>
    %164 = arith.sitofp %163 : vector<8x64xi32> to vector<8x64xf32>
    %165 = arith.addf %153, %164 : vector<8x64xf32>
    %166 = vector.broadcast %160 : vector<8x1xi32> to vector<8x64xi32>
    %167 = arith.cmpi eq, %166, %0 : vector<8x64xi32>
    %168 = arith.extui %167 : vector<8x64xi1> to vector<8x64xi32>
    %169 = arith.sitofp %168 : vector<8x64xi32> to vector<8x64xf32>
    %170 = arith.addf %158, %169 : vector<8x64xf32>
    %c0_43 = arith.constant 0 : index
    %c14 = arith.constant 14 : index
    %171 = vector.load %arg0[%c0_43, %c14] : memref<8x16xi32, #tpu.memory_space<vmem>>, vector<8x1xi32>
    %c0_44 = arith.constant 0 : index
    %c14_45 = arith.constant 14 : index
    %172 = vector.load %arg1[%c0_44, %c14_45] : memref<8x16xi32, #tpu.memory_space<vmem>>, vector<8x1xi32>
    %173 = vector.broadcast %171 : vector<8x1xi32> to vector<8x64xi32>
    %174 = arith.cmpi eq, %173, %0 : vector<8x64xi32>
    %175 = arith.extui %174 : vector<8x64xi1> to vector<8x64xi32>
    %176 = arith.sitofp %175 : vector<8x64xi32> to vector<8x64xf32>
    %177 = arith.addf %165, %176 : vector<8x64xf32>
    %178 = vector.broadcast %172 : vector<8x1xi32> to vector<8x64xi32>
    %179 = arith.cmpi eq, %178, %0 : vector<8x64xi32>
    %180 = arith.extui %179 : vector<8x64xi1> to vector<8x64xi32>
    %181 = arith.sitofp %180 : vector<8x64xi32> to vector<8x64xf32>
    %182 = arith.addf %170, %181 : vector<8x64xf32>
    %c0_46 = arith.constant 0 : index
    %c15 = arith.constant 15 : index
    %183 = vector.load %arg0[%c0_46, %c15] : memref<8x16xi32, #tpu.memory_space<vmem>>, vector<8x1xi32>
    %c0_47 = arith.constant 0 : index
    %c15_48 = arith.constant 15 : index
    %184 = vector.load %arg1[%c0_47, %c15_48] : memref<8x16xi32, #tpu.memory_space<vmem>>, vector<8x1xi32>
    %185 = vector.broadcast %183 : vector<8x1xi32> to vector<8x64xi32>
    %186 = arith.cmpi eq, %185, %0 : vector<8x64xi32>
    %187 = arith.extui %186 : vector<8x64xi1> to vector<8x64xi32>
    %188 = arith.sitofp %187 : vector<8x64xi32> to vector<8x64xf32>
    %189 = arith.addf %177, %188 : vector<8x64xf32>
    %190 = vector.broadcast %184 : vector<8x1xi32> to vector<8x64xi32>
    %191 = arith.cmpi eq, %190, %0 : vector<8x64xi32>
    %192 = arith.extui %191 : vector<8x64xi1> to vector<8x64xi32>
    %193 = arith.sitofp %192 : vector<8x64xi32> to vector<8x64xf32>
    %194 = arith.addf %182, %193 : vector<8x64xf32>
    %c0_49 = arith.constant 0 : index
    %c0_50 = arith.constant 0 : index
    %195 = vector.load %arg2[%c0_49, %c0_50] : memref<64x128xf32, #tpu.memory_space<vmem>>, vector<64x128xf32>
    %cst_51 = arith.constant dense<0.000000e+00> : vector<8x128xf32>
    %196 = tpu.matmul %189, %195, %cst_51 {dimension_numbers = #tpu.dot_dimension_numbers<[1], [0], [0], [1], [0, 0, 1, 1], [], []>, precision = #tpu.contract_precision<fp32>} : vector<8x64xf32>, vector<64x128xf32>, vector<8x128xf32> -> vector<8x128xf32>
    %cst_52 = arith.constant dense<0.000000e+00> : vector<8x128xf32>
    %197 = tpu.matmul %194, %195, %cst_52 {dimension_numbers = #tpu.dot_dimension_numbers<[1], [0], [0], [1], [0, 0, 1, 1], [], []>, precision = #tpu.contract_precision<fp32>} : vector<8x64xf32>, vector<64x128xf32>, vector<8x128xf32> -> vector<8x128xf32>
    %198 = arith.mulf %196, %196 : vector<8x128xf32>
    %cst_53 = arith.constant dense<0.000000e+00> : vector<8xf32>
    %199 = vector.multi_reduction <add>, %198, %cst_53 [1] : vector<8x128xf32> to vector<8xf32>
    %200 = vector.shape_cast %199 : vector<8xf32> to vector<8x1xf32>
    %cst_54 = arith.constant 2.560000e-06 : f32
    %201 = vector.broadcast %cst_54 : f32 to vector<8x1xf32>
    %202 = arith.maximumf %200, %201 : vector<8x1xf32>
    %203 = math.rsqrt %202 : vector<8x1xf32>
    %204 = arith.mulf %197, %197 : vector<8x128xf32>
    %cst_55 = arith.constant dense<0.000000e+00> : vector<8xf32>
    %205 = vector.multi_reduction <add>, %204, %cst_55 [1] : vector<8x128xf32> to vector<8xf32>
    %206 = vector.shape_cast %205 : vector<8xf32> to vector<8x1xf32>
    %cst_56 = arith.constant 2.560000e-06 : f32
    %207 = vector.broadcast %cst_56 : f32 to vector<8x1xf32>
    %208 = arith.maximumf %206, %207 : vector<8x1xf32>
    %209 = math.rsqrt %208 : vector<8x1xf32>
    %cst_57 = arith.constant 2.000000e+01 : f32
    %210 = vector.broadcast %cst_57 : f32 to vector<8x1xf32>
    %211 = arith.mulf %203, %210 : vector<8x1xf32>
    %212 = vector.broadcast %211 : vector<8x1xf32> to vector<8x128xf32>
    %213 = arith.mulf %196, %212 : vector<8x128xf32>
    %214 = vector.broadcast %209 : vector<8x1xf32> to vector<8x128xf32>
    %215 = arith.mulf %197, %214 : vector<8x128xf32>
    %cst_58 = arith.constant dense<0.000000e+00> : vector<8x8xf32>
    %216 = tpu.matmul %213, %215, %cst_58 {dimension_numbers = #tpu.dot_dimension_numbers<[1], [1], [0], [0], [0, 0, 1, 0], [], []>, precision = #tpu.contract_precision<fp32>} : vector<8x128xf32>, vector<8x128xf32>, vector<8x8xf32> -> vector<8x8xf32>
    %217 = arith.mulf %213, %215 : vector<8x128xf32>
    %cst_59 = arith.constant dense<0.000000e+00> : vector<8xf32>
    %218 = vector.multi_reduction <add>, %217, %cst_59 [1] : vector<8x128xf32> to vector<8xf32>
    %219 = vector.shape_cast %218 : vector<8xf32> to vector<8x1xf32>
    %220 = tpu.iota {dimensions = array<i32: 1>} : vector<8x8xi32>
    %c4_i32 = arith.constant 4 : i32
    %221 = vector.broadcast %c4_i32 : i32 to vector<8x8xi32>
    %222 = arith.cmpi slt, %220, %221 : vector<8x8xi32>
    %cst_60 = arith.constant -1.000000e+30 : f32
    %223 = vector.broadcast %cst_60 : f32 to vector<8x8xf32>
    %224 = arith.select %222, %216, %223 : vector<8x8xi1>, vector<8x8xf32>
    %cst_61 = arith.constant dense<0xFF800000> : vector<8xf32>
    %225 = vector.multi_reduction <maximumf>, %224, %cst_61 [1] : vector<8x8xf32> to vector<8xf32>
    %226 = vector.shape_cast %225 : vector<8xf32> to vector<8x1xf32>
    %227 = vector.broadcast %226 : vector<8x1xf32> to vector<8x8xf32>
    %228 = arith.subf %224, %227 : vector<8x8xf32>
    %229 = math.exp %228 : vector<8x8xf32>
    %cst_62 = arith.constant dense<0.000000e+00> : vector<8xf32>
    %230 = vector.multi_reduction <add>, %229, %cst_62 [1] : vector<8x8xf32> to vector<8xf32>
    %231 = vector.shape_cast %230 : vector<8xf32> to vector<8x1xf32>
    %232 = math.log %231 : vector<8x1xf32>
    %233 = arith.addf %226, %232 : vector<8x1xf32>
    %234 = arith.subf %233, %219 : vector<8x1xf32>
    %235 = tpu.iota {dimensions = array<i32: 0>} : vector<8x1xi32>
    %c4_i32_63 = arith.constant 4 : i32
    %236 = vector.broadcast %c4_i32_63 : i32 to vector<8x1xi32>
    %237 = arith.cmpi slt, %235, %236 : vector<8x1xi32>
    %cst_64 = arith.constant 0.000000e+00 : f32
    %238 = vector.broadcast %cst_64 : f32 to vector<8x1xf32>
    %239 = arith.select %237, %234, %238 : vector<8x1xi1>, vector<8x1xf32>
    %cst_65 = arith.constant dense<0.000000e+00> : vector<1xf32>
    %240 = vector.multi_reduction <add>, %239, %cst_65 [0] : vector<8x1xf32> to vector<1xf32>
    %241 = vector.shape_cast %240 : vector<1xf32> to vector<1x1xf32>
    %cst_66 = arith.constant 2.500000e-01 : f32
    %242 = vector.broadcast %cst_66 : f32 to vector<1x1xf32>
    %243 = arith.mulf %241, %242 : vector<1x1xf32>
    %c0_67 = arith.constant 0 : index
    %c0_68 = arith.constant 0 : index
    %244 = vector.load %arg3[%c0_67, %c0_68] : memref<1x1xf32, #tpu.memory_space<vmem>>, vector<1x1xf32>
    tpu.vector_store %arg3[%c0_67, %c0_68], %243 {strides = array<i32>} : memref<1x1xf32, #tpu.memory_space<vmem>>, vector<1x1xf32>,
    return
  }
}

</mosaic_0001>

<bundles_post_ra>
// kernel: tpu_custom_call.1
= control target key start
LH: loop header
LB: loop body
LE: loop exit
PB: predicated region body
PF: predicated region fallthrough
CT: control target
= control target key end

     0   :  { %8 = vsyncpa [#allocation3], 0  ;;  %s3067_s0 = inlined_call_operand.hbm [shape: s32[8,16], index: 0, kind: input, shape index: {}]   ;;  %s3068_s1 = inlined_call_operand.hbm [shape: s32[8,16], index: 1, kind: input, shape index: {}]   ;;  %s3069_s2 = inlined_call_operand.hbm [shape: f32[64,128], index: 2, kind: input, shape index: {}]   ;;  %s3070_s3 = inlined_call_operand.hbm [shape: f32[1,1], index: 3, kind: output, shape index: {}]  }
   0x1   :  { %9 = vsyncpa [#allocation6], 0 }
   0x2   :  { %10 = vsyncpa [#allocation4], 0  ;;  %s2619_s12 = smov [#allocation5]   ;;  %s2620_s14 = smov [#allocation2]  }
   0x3   :  { %s27_s13 = sshll.u32 %s2619_s12, 4  ;;  %s17_s15 = sshll.u32 %s2620_s14, 4  ;;  %s28_s13 = int_to_ptr.vmem [resolvable:$true] %s27_s13  ;;  %s18_s15 = int_to_ptr.vmem [resolvable:$true] %s17_s15 }
   0x4   :  { %s2525_s18 = scalar_lea.hbm %s3068_s1, 128 }
   0x5   :  { %p2526_p0 = scmp.ne.s32.totalorder %s3068_s1, %s2525_s18  ;;  %p2529_p1 = scmp.lt.u32.totalorder %s2525_s18, %s3068_s1 }
   0x7   :  { %p2531_p2 = pnand %p2529_p1, %p2526_p0 }
   0x9   :  { %2534 = shalt.err (!%p2531_p2)
}
   0xa   :  { %s2535_s23 = scalar_lea.vmem %s28_s13, 128  ;;  %p2540_p4 = scmp.lt.s32.totalorder %s28_s13, %s28_s13 }
   0xb   :  { %p2536_p3 = scmp.ne.s32.totalorder %s28_s13, %s2535_s23  ;;  %p2541_p5 = scmp.lt.s32.totalorder %s2535_s23, %s2535_s23 }
   0xd   :  { %p2542_p6 = por %p2541_p5, %p2540_p4 }
   0xf   :  { %p2543_p7 = pnand %p2542_p6, %p2536_p3 }
  0x11   :  { %2546 = shalt.err (!%p2543_p7)
}
  0x12   :  { %30 = dma.hbm_to_vmem [thread:$0]  %s3068_s1, 128, %s28_s13, [#allocation6]  }
  0x13   :  { %s2547_s28 = scalar_lea.hbm %s3067_s0, 128 }
  0x14   :  { %p2548_p8 = scmp.ne.s32.totalorder %s3067_s0, %s2547_s28  ;;  %p2551_p9 = scmp.lt.u32.totalorder %s2547_s28, %s3067_s0 }
  0x16   :  { %p2553_p10 = pnand %p2551_p9, %p2548_p8 }
  0x18   :  { %2556 = shalt.err (!%p2553_p10)
}
  0x19   :  { %s2557_s6 = scalar_lea.vmem %s18_s15, 128  ;;  %p2562_p12 = scmp.lt.s32.totalorder %s18_s15, %s18_s15 }
  0x1a   :  { %p2558_p11 = scmp.ne.s32.totalorder %s18_s15, %s2557_s6  ;;  %p2563_p13 = scmp.lt.s32.totalorder %s2557_s6, %s2557_s6 }
  0x1c   :  { %p2564_p0 = por %p2563_p13, %p2562_p12 }
  0x1e   :  { %p2565_p1 = pnand %p2564_p0, %p2558_p11 }
  0x20   :  { %2568 = shalt.err (!%p2565_p1)
}
  0x21   :  { %20 = dma.hbm_to_vmem [thread:$0]  %s3067_s0, 128, %s18_s15, [#allocation3]  }
  0x22   :  { %s2621_s8 = smov [#allocation7]   ;;  %s2569_s12 = scalar_lea.hbm %s3069_s2, 1024 }
  0x23   :  { %s36_s9 = sshll.u32 %s2621_s8, 4  ;;  %p2570_p2 = scmp.ne.s32.totalorder %s3069_s2, %s2569_s12  ;;  %s37_s9 = int_to_ptr.vmem [resolvable:$true] %s36_s9 }
  0x24   :  { %p2573_p3 = scmp.lt.u32.totalorder %s2569_s12, %s3069_s2 }
  0x26   :  { %p2575_p4 = pnand %p2573_p3, %p2570_p2 }
  0x28   :  { %2578 = shalt.err (!%p2575_p4)
}
  0x29   :  { %s2579_s18 = scalar_lea.vmem %s37_s9, 1024  ;;  %p2584_p6 = scmp.lt.s32.totalorder %s37_s9, %s37_s9 }
  0x2a   :  { %p2580_p5 = scmp.ne.s32.totalorder %s37_s9, %s2579_s18  ;;  %p2585_p7 = scmp.lt.s32.totalorder %s2579_s18, %s2579_s18 }
  0x2c   :  { %p2586_p8 = por %p2585_p7, %p2584_p6 }
  0x2e   :  { %p2587_p9 = pnand %p2586_p8, %p2580_p5 }
  0x30   :  { %2590 = shalt.err (!%p2587_p9)
}
  0x31   :  { %s2622_s0 = smov 128   ;;  %s2623_s15 = smov 8  }
  0x32   :  { %42 = dma.hbm_to_vmem [thread:$0]  %s3069_s2, 1024, %s37_s9, [#allocation6], %s2622_s0, %s2622_s0, %s2623_s15  }
  0x33   :  { %2613 = dma.done.wait [#allocation3], 128  }
  0x34   :  { %2614 = vsyncadd [#allocation3], 4294967168 }
  0x35   :  { %2615 = dma.done.wait [#allocation6], 1152  }
  0x36   :  { %2616 = vsyncadd [#allocation6], 4294966144  ;;  %v2624_v0 = vmov 2   ;;  %v2625_v1 = vmov 0   ;;  %v2700_v2 = vld [vmem:[#allocation2] sm:$0xff]  ;;  %v2626_v3 = vmov 3  }
  0x37   :  { %2486 = vset.pattern.permute.xlu1 %v2624_v0  ;;  %2484 = vset.pattern.permute.xlu0 %v2625_v1  ;;  %v2627_v4 = vmov 1   ;;  %v2628_v5 = vmov 4   ;;  %v2629_v6 = vmov 5   ;;  %v2630_v7 = vmov 6   ;;  %v2716_v11 = vld [vmem:[#allocation5] sm:$0xff]  ;;  %v280_v16 = vld [vmem:[#allocation7] sm:$0xff] }
  0x38   :  { %85 = vperm.xlu1 %2486, %v2700_v2   ;;  %57 = vperm.xlu0 %2484, %v2700_v2   ;;  %v2631_v8 = vmov 8   ;;  %v2632_v9 = vmov 7   ;;  %v2633_v10 = vmov 9   ;;  %v2634_v12 = vmov 12   ;;  %v281_v17 = vld [vmem:[#allocation7 + $0x8] sm:$0xff]  ;;  %v282_v23 = vld [vmem:[#allocation7 + $0x10] sm:$0xff] }
  0x39   :  { %v2635_v13 = vmov 10   ;;  %v2636_v14 = vmov 15   ;;  %v2637_v15 = vmov 11   ;;  %v293_v18 = vand.u32 4294901760, %v280_v16  ;;  %v283_v24 = vld [vmem:[#allocation7 + $0x18] sm:$0xff]  ;;  %v284_v33 = vld [vmem:[#allocation7 + $0x20] sm:$0xff] }
  0x3a   :  { %v296_v19 = vand.u32 4294901760, %v281_v17  ;;  %v2638_v22 = vmov 13   ;;  %v299_v27 = vand.u32 4294901760, %v282_v23  ;;  %v302_v28 = vand.u32 4294901760, %v283_v24  ;;  %v285_v34 = vld [vmem:[#allocation7 + $0x28] sm:$0xff]  ;;  %v286_v47 = vld [vmem:[#allocation7 + $0x30] sm:$0xff] }
  0x3b   :  { %v2731_v20 = vsub.f32 %v280_v16, %v293_v18  ;;  %v305_v39 = vand.u32 4294901760, %v284_v33  ;;  %v308_v40 = vand.u32 4294901760, %v285_v34  ;;  %v2639_v44 = vmov 0.0|0.0   ;;  %v287_v48 = vld [vmem:[#allocation7 + $0x38] sm:$0xff]  ;;  %s2643_s2 = smov [#allocation8]  }
  0x3c   :  { %2487 = vset.pattern.permute.xlu1 %v2626_v3  ;;  %2485 = vset.pattern.permute.xlu0 %v2627_v4  ;;  %v2733_v21 = vsub.f32 %v281_v17, %v296_v19  ;;  %v2745_v31 = vsub.f32 %v282_v23, %v299_v27  ;;  %v2747_v32 = vsub.f32 %v283_v24, %v302_v28  ;;  %v311_v51 = vand.u32 4294901760, %v286_v47  ;;  %s1866_s21 = sshll.u32 %s2643_s2, 4  ;;  %s1867_s21 = int_to_ptr.vmem [resolvable:$true] %s1866_s21 }
  0x3d   :  { %99 = vperm.xlu1 %2487, %v2700_v2   ;;  %71 = vperm.xlu0 %2485, %v2700_v2   ;;  %v378_v25 = vand.u32 4294901760, %v2731_v20  ;;  %v2764_v45 = vsub.f32 %v284_v33, %v305_v39  ;;  %v2766_v46 = vsub.f32 %v285_v34, %v308_v40  ;;  %v314_v52 = vand.u32 4294901760, %v287_v48  ;;  %s2591_s22 = scalar_lea.vmem %s1867_s21, 16  ;;  %s2595_s23 = scalar_lea.vmem %s1867_s21, 32 }
  0x3e   :  { %v385_v26 = vand.u32 4294901760, %v2733_v21  ;;  %v392_v37 = vand.u32 4294901760, %v2745_v31  ;;  %v399_v38 = vand.u32 4294901760, %v2747_v32  ;;  %2298 = vmatprep.subr.bf16.mxu0 %v2639_v44  ;;  %2286 = vmatprep.subr.bf16.mxu1 %v2639_v44  ;;  %v2769_v53 = vpack.c.bf16 %v296_v19, %v293_v18  ;;  %p2592_p10 = scmp.ne.s32.totalorder %s1867_s21, %s2591_s22  ;;  %p2596_p11 = scmp.lt.s32.totalorder %s1867_s21, %s1867_s21 }
  0x3f   :  { %v379_v29 = vsub.f32 %v2731_v20, %v378_v25  ;;  %v406_v54 = vand.u32 4294901760, %v2764_v45  ;;  %v413_v55 = vand.u32 4294901760, %v2766_v46  ;;  %v419_v57 = vsub.f32 %v286_v47, %v311_v51  ;;  %p2597_p12 = scmp.lt.s32.totalorder %s2595_s23, %s2591_s22 }
  0x40   :  { %v386_v30 = vsub.f32 %v2733_v21, %v385_v26  ;;  %v393_v42 = vsub.f32 %v2745_v31, %v392_v37  ;;  %v400_v43 = vsub.f32 %v2747_v32, %v399_v38  ;;  %v426_v58 = vsub.f32 %v287_v48, %v314_v52  ;;  %2288 = vmatpush3.bf16.msra.mxu1 %v2769_v53 }
  0x41   :  { %2488 = vset.pattern.permute.xlu1 %v2628_v5  ;;  %2489 = vset.pattern.permute.xlu0 %v2629_v6  ;;  %v380_v35 = vand.u32 4294901760, %v379_v29  ;;  %v407_v59 = vsub.f32 %v2764_v45, %v406_v54  ;;  %v414_v60 = vsub.f32 %v2766_v46, %v413_v55  ;;  %v2780_v61 = vpack.c.bf16 %v302_v28, %v299_v27  ;;  %p2598_p13 = por %p2597_p12, %p2596_p11 }
  0x42   :  { %113 = vperm.xlu1 %2488, %v2700_v2   ;;  %127 = vperm.xlu0 %2489, %v2700_v2   ;;  %v387_v36 = vand.u32 4294901760, %v386_v30  ;;  %v394_v49 = vand.u32 4294901760, %v393_v42  ;;  %v401_v50 = vand.u32 4294901760, %v400_v43  ;;  %v420_v62 = vand.u32 4294901760, %v419_v57 }
  0x43   :  { %2289 = vmatprep.subr.bf16.mxu1 %v2639_v44  ;;  %v427_v63 = vand.u32 4294901760, %v426_v58  ;;  %v2790_v16 = vpack.c.bf16 %v308_v40, %v305_v39  ;;  %vm2641_vm0 = vmmov 0   ;;  %v2642_v18 = vmov 0.0   ;;  %p2599_p0 = pnand %p2598_p13, %p2592_p10 }
  0x44   :  { %v2754_v41 = vpack.c.bf16 %v387_v36, %v380_v35  ;;  %v2775_v56 = vpack.c.bf16 %v401_v50, %v394_v49  ;;  %2291 = vmatpush3.bf16.msra.mxu1 %v2780_v61  ;;  %2063 = vmatprep.mubr.msk.f32.mxu0 %vm2641_vm0, %v2642_v18  ;;  %v2817_v19 = vpack.c.bf16 %v2747_v32, %v2745_v31  ;;  %v52_v28 = vlaneseq }
  0x45   :  { %2292 = vmatprep.subr.bf16.mxu1 %v2639_v44  ;;  %2044 = vmatprep.mubr.msk.f32.mxu1 %vm2641_vm0, %v2642_v18  ;;  %v2849_v23 = vpack.c.bf16 %v427_v63, %v420_v62 }
  0x46   :  { %2490 = vset.pattern.permute.xlu1 %v2630_v7  ;;  %2492 = vset.pattern.permute.xlu0 %v2631_v8 }
  0x47   :  { %141 = vperm.xlu1 %2490, %v2700_v2   ;;  %169 = vperm.xlu0 %2492, %v2700_v2  }
  0x48   :  { %2300 = vmatpush3.bf16.msra.mxu0 %v2754_v41  ;;  %2294 = vmatpush3.bf16.msra.mxu1 %v2790_v16 }
  0x49   :  { %2301 = vmatprep.subr.bf16.mxu0 %v2639_v44  ;;  %2295 = vmatprep.subr.bf16.mxu1 %v2639_v44 }
  0x4b   :  { %2491 = vset.pattern.permute.xlu1 %v2632_v9  ;;  %2495 = vset.pattern.permute.xlu0 %v2633_v10 }
  0x4c   :  { %155 = vperm.xlu1 %2491, %v2700_v2   ;;  %183 = vperm.xlu0 %2495, %v2700_v2  }
  0x4d   :  { %2303 = vmatpush3.bf16.msra.mxu0 %v2775_v56 }
  0x4e   :  { %2304 = vmatprep.subr.bf16.mxu0 %v2639_v44 }
  0x50   :  { %2493 = vset.pattern.permute.xlu1 %v2625_v1  ;;  %2498 = vset.pattern.permute.xlu0 %v2626_v3  ;;  %v415_v1 = vand.u32 4294901760, %v414_v60  ;;  %v2640_v3 = vmov 14  }
  0x51   :  { %64 = vperm.xlu1 %2493, %v2716_v11   ;;  %106 = vperm.xlu0 %2498, %v2716_v11  }
  0x55   :  { %2494 = vset.pattern.permute.xlu1 %v2627_v4  ;;  %2501 = vset.pattern.permute.xlu0 %v2634_v12  ;;  %v421_v4 = vsub.f32 %v419_v57, %v420_v62 }
  0x56   :  { %78 = vperm.xlu1 %2494, %v2716_v11   ;;  %225 = vperm.xlu0 %2501, %v2700_v2  }
  0x5a   :  { %2496 = vset.pattern.permute.xlu1 %v2624_v0  ;;  %2504 = vset.pattern.permute.xlu0 %v2630_v7  ;;  %v408_v0 = vand.u32 4294901760, %v407_v59  ;;  %v422_v7 = vand.u32 4294901760, %v421_v4 }
  0x5b   :  { %92 = vperm.xlu1 %2496, %v2716_v11   ;;  %148 = vperm.xlu0 %2504, %v2716_v11  }
  0x5f   :  { %2497 = vset.pattern.permute.xlu1 %v2635_v13  ;;  %2507 = vset.pattern.permute.xlu0 %v2636_v14 }
  0x60   :  { %197 = vperm.xlu1 %2497, %v2700_v2   ;;  %267 = vperm.xlu0 %2507, %v2700_v2  }
  0x64   :  { %2499 = vset.pattern.permute.xlu1 %v2637_v15  ;;  %2510 = vset.pattern.permute.xlu0 %v2635_v13 }
  0x65   :  { %211 = vperm.xlu1 %2499, %v2700_v2   ;;  %204 = vperm.xlu0 %2510, %v2716_v11  }
  0x69   :  { %2500 = vset.pattern.permute.xlu1 %v2628_v5  ;;  %2513 = vset.pattern.permute.xlu0 %v2638_v22  ;;  %v428_v5 = vsub.f32 %v426_v58, %v427_v63 }
  0x6a   :  { %120 = vperm.xlu1 %2500, %v2716_v11   ;;  %246 = vperm.xlu0 %2513, %v2716_v11  }
  0x6b   :  { %v429_v13 = vand.u32 4294901760, %v428_v5 }
  0x6d   :  { %v2794_v17 = vpack.c.bf16 %v429_v13, %v422_v7 }
  0x6e   :  { %2502 = vset.pattern.permute.xlu1 %v2629_v6  ;;  %2516 = vset.pattern.permute.xlu0 %v2636_v14  ;;  %v2786_v6 = vpack.c.bf16 %v415_v1, %v408_v0 }
  0x6f   :  { %134 = vperm.xlu1 %2502, %v2716_v11  }
  0x70   :  { %2306 = vmatpush3.bf16.msra.mxu0 %v2786_v6 }
  0x71   :  { %2307 = vmatprep.subr.bf16.mxu0 %v2639_v44 }
  0x73   :  { %2503 = vset.pattern.permute.xlu1 %v2638_v22  ;;  %v2824_v22 = vpack.c.bf16 %v2766_v46, %v2764_v45 }
  0x74   :  { %239 = vperm.xlu1 %2503, %v2700_v2   ;;  %2309 = vmatpush3.bf16.msra.mxu0 %v2794_v17 }
  0x75   :  { %2310 = vmatprep.subr.bf16.mxu0 %v2639_v44 }
  0x78   :  { %2505 = vset.pattern.permute.xlu1 %v2640_v3 }
  0x79   :  { %253 = vperm.xlu1 %2505, %v2700_v2   ;;  %v2804_v2 = vpack.c.bf16 %v2733_v21, %v2731_v20  ;;  %v2852_v21 = vand.u32 127, %v52_v28 }
  0x7d   :  { %2506 = vset.pattern.permute.xlu1 %v2632_v9  ;;  %v2811_v9 = vpack.c.bf16 %v314_v52, %v311_v51 }
  0x7e   :  { %162 = vperm.xlu1 %2506, %v2716_v11  }
  0x7f   :  { %2297 = vmatpush3.bf16.msra.mxu1 %v2811_v9 }
  0x80   :  { %2358 = vmatprep.subr.bf16.mxu1 %v2639_v44 }
  0x82   :  { %2508 = vset.pattern.permute.xlu1 %v2631_v8  ;;  %v2828_v8 = vpack.c.bf16 %v426_v58, %v419_v57 }
  0x83   :  { %176 = vperm.xlu1 %2508, %v2716_v11  }
  0x87   :  { %2509 = vset.pattern.permute.xlu1 %v2633_v10  ;;  %v2839_v10 = vpack.c.bf16 %v385_v26, %v378_v25 }
  0x88   :  { %190 = vperm.xlu1 %2509, %v2716_v11  }
  0x8c   :  { %2511 = vset.pattern.permute.xlu1 %v2637_v15  ;;  %v2847_v15 = vpack.c.bf16 %v413_v55, %v406_v54 }
  0x8d   :  { %218 = vperm.xlu1 %2511, %v2716_v11  }
  0x91   :  { %2512 = vset.pattern.permute.xlu1 %v2634_v12  ;;  %v2845_v12 = vpack.c.bf16 %v399_v38, %v392_v37 }
  0x92   :  { %232 = vperm.xlu1 %2512, %v2716_v11  }
  0x96   :  { %2514 = vset.pattern.permute.xlu1 %v2640_v3 }
  0x97   :  { %260 = vperm.xlu1 %2514, %v2716_v11  }
  0x9b   :  { %2515 = vset.pattern.permute.xlu1 %v2636_v14 }
  0x9c   :  { %274 = vperm.xlu1 %2515, %v2716_v11  }
  0xb7   :  { %v86_v24 = vpop.permute.xlu1 %85  ;;  %v58_v11 = vpop.permute.xlu0 %57 }
  0xb8   :  { %vm59_vm1 = vcmp.eq.s32.totalorder %v58_v11, %v2852_v21  ;;  %vm87_vm3 = vcmp.eq.s32.totalorder %v86_v24, %v2852_v21 }
  0xb9   :  { %v1876_v26 = vsel %vm59_vm1, 1.0, %v2642_v18  ;;  %v1880_v33 = vsel %vm87_vm3, 1.0, %v2642_v18 }
  0xbc   :  { %v100_v14 = vpop.permute.xlu1 %99  ;;  %v72_v29 = vpop.permute.xlu0 %71 }
  0xbd   :  { %vm73_vm2 = vcmp.eq.s32.totalorder %v72_v29, %v2852_v21  ;;  %vm101_vm4 = vcmp.eq.s32.totalorder %v100_v14, %v2852_v21 }
  0xbe   :  { %v1878_v30 = vsel %vm73_vm2, 1.0, %v2642_v18  ;;  %v1882_v36 = vsel %vm101_vm4, 1.0, %v2642_v18 }
  0xbf   :  { %v76_v32 = vadd.f32 %v1878_v30, %v1876_v26 }
  0xc1   :  { %v114_v27 = vpop.permute.xlu1 %113  ;;  %v90_v34 = vadd.f32 %v1880_v33, %v76_v32  ;;  %v128_v37 = vpop.permute.xlu0 %127 }
  0xc2   :  { %vm115_vm5 = vcmp.eq.s32.totalorder %v114_v27, %v2852_v21  ;;  %vm129_vm6 = vcmp.eq.s32.totalorder %v128_v37, %v2852_v21 }
  0xc3   :  { %v104_v38 = vadd.f32 %v1882_v36, %v90_v34  ;;  %v1884_v39 = vsel %vm115_vm5, 1.0, %v2642_v18  ;;  %v1886_v43 = vsel %vm129_vm6, 1.0, %v2642_v18 }
  0xc5   :  { %v118_v42 = vadd.f32 %v1884_v39, %v104_v38 }
  0xc6   :  { %v142_v20 = vpop.permute.xlu1 %141  ;;  %v170_v45 = vpop.permute.xlu0 %169 }
  0xc7   :  { %vm143_vm7 = vcmp.eq.s32.totalorder %v142_v20, %v2852_v21  ;;  %v132_v47 = vadd.f32 %v1886_v43, %v118_v42  ;;  %vm171_vm9 = vcmp.eq.s32.totalorder %v170_v45, %v2852_v21 }
  0xc8   :  { %v1888_v48 = vsel %vm143_vm7, 1.0, %v2642_v18  ;;  %v1892_v55 = vsel %vm171_vm9, 1.0, %v2642_v18 }
  0xc9   :  { %v146_v52 = vadd.f32 %v1888_v48, %v132_v47 }
  0xcb   :  { %v156_v25 = vpop.permute.xlu1 %155  ;;  %v184_v50 = vpop.permute.xlu0 %183 }
  0xcc   :  { %vm157_vm8 = vcmp.eq.s32.totalorder %v156_v25, %v2852_v21  ;;  %vm185_vm10 = vcmp.eq.s32.totalorder %v184_v50, %v2852_v21 }
  0xcd   :  { %v1890_v49 = vsel %vm157_vm8, 1.0, %v2642_v18  ;;  %v1894_v60 = vsel %vm185_vm10, 1.0, %v2642_v18  ;;  %vm288_vm8 = vcmask 523264  }
  0xce   :  { %v160_v54 = vadd.f32 %v1890_v49, %v146_v52 }
  0xd0   :  { %v65_v31 = vpop.permute.xlu1 %64  ;;  %v107_v57 = vpop.permute.xlu0 %106  ;;  %v174_v59 = vadd.f32 %v1892_v55, %v160_v54 }
  0xd1   :  { %vm66_vm15 = vcmp.eq.s32.totalorder %v65_v31, %v2852_v21  ;;  %vm108_vm3 = vcmp.eq.s32.totalorder %v107_v57, %v2852_v21 }
  0xd2   :  { %v188_v1 = vadd.f32 %v1894_v60, %v174_v59  ;;  %v1877_v11 = vsel %vm66_vm15, 1.0, %v2642_v18  ;;  %v1883_v32 = vsel %vm108_vm3, 1.0, %v2642_v18 }
  0xd5   :  { %v79_v35 = vpop.permute.xlu1 %78  ;;  %v226_v62 = vpop.permute.xlu0 %225 }
  0xd6   :  { %vm80_vm13 = vcmp.eq.s32.totalorder %v79_v35, %v2852_v21  ;;  %vm227_vm14 = vcmp.eq.s32.totalorder %v226_v62, %v2852_v21 }
  0xd7   :  { %v1879_v7 = vsel %vm80_vm13, 1.0, %v2642_v18  ;;  %v1900_v14 = vsel %vm227_vm14, 1.0, %v2642_v18 }
  0xd8   :  { %v83_v29 = vadd.f32 %v1879_v7, %v1877_v11 }
  0xda   :  { %v93_v40 = vpop.permute.xlu1 %92  ;;  %v149_v4 = vpop.permute.xlu0 %148 }
  0xdb   :  { %vm94_vm1 = vcmp.eq.s32.totalorder %v93_v40, %v2852_v21  ;;  %vm150_vm9 = vcmp.eq.s32.totalorder %v149_v4, %v2852_v21 }
  0xdc   :  { %v1881_v20 = vsel %vm94_vm1, 1.0, %v2642_v18  ;;  %v1889_v48 = vsel %vm150_vm9, 1.0, %v2642_v18 }
  0xdd   :  { %v97_v30 = vadd.f32 %v1881_v20, %v83_v29 }
  0xdf   :  { %v198_v46 = vpop.permute.xlu1 %197  ;;  %v268_v27 = vpop.permute.xlu0 %267  ;;  %v111_v38 = vadd.f32 %v1883_v32, %v97_v30 }
  0xe0   :  { %vm199_vm11 = vcmp.eq.s32.totalorder %v198_v46, %v2852_v21  ;;  %vm269_vm4 = vcmp.eq.s32.totalorder %v268_v27, %v2852_v21 }
  0xe1   :  { %v1896_v63 = vsel %vm199_vm11, 1.0, %v2642_v18  ;;  %v1906_v35 = vsel %vm269_vm4, 1.0, %v2642_v18  ;;  %vm1831_vm4 = vcmp.lt.s32.totalorder %v2852_v21, 4 }
  0xe2   :  { %v202_v5 = vadd.f32 %v1896_v63, %v188_v1 }
  0xe4   :  { %v212_v51 = vpop.permute.xlu1 %211  ;;  %v205_v57 = vpop.permute.xlu0 %204 }
  0xe5   :  { %vm213_vm12 = vcmp.eq.s32.totalorder %v212_v51, %v2852_v21  ;;  %vm206_vm13 = vcmp.eq.s32.totalorder %v205_v57, %v2852_v21 }
  0xe6   :  { %v1898_v3 = vsel %vm213_vm12, 1.0, %v2642_v18 }
  0xe7   :  { %v216_v13 = vadd.f32 %v1898_v3, %v202_v5  ;;  %v1897_v3 = vsel %vm206_vm13, 1.0, %v2642_v18 }
  0xe9   :  { %v121_v58 = vpop.permute.xlu1 %120  ;;  %v230_v26 = vadd.f32 %v1900_v14, %v216_v13  ;;  %v247_v13 = vpop.permute.xlu0 %246 }
  0xea   :  { %vm122_vm5 = vcmp.eq.s32.totalorder %v121_v58, %v2852_v21  ;;  %vm248_vm1 = vcmp.eq.s32.totalorder %v247_v13, %v2852_v21 }
  0xeb   :  { %v1885_v36 = vsel %vm122_vm5, 1.0, %v2642_v18  ;;  %v1903_v20 = vsel %vm248_vm1, 1.0, %v2642_v18  ;;  %vm1833_vm5 = vcmask 64512  }
  0xec   :  { %v125_v43 = vadd.f32 %v1885_v36, %v111_v38 }
  0xee   :  { %v135_v0 = vpop.permute.xlu1 %134 }
  0xef   :  { %vm136_vm7 = vcmp.eq.s32.totalorder %v135_v0, %v2852_v21 }
  0xf0   :  { %v1887_v39 = vsel %vm136_vm7, 1.0, %v2642_v18 }
  0xf1   :  { %v139_v46 = vadd.f32 %v1887_v39, %v125_v43 }
  0xf3   :  { %v240_v24 = vpop.permute.xlu1 %239  ;;  %v153_v52 = vadd.f32 %v1889_v48, %v139_v46 }
  0xf4   :  { %vm241_vm2 = vcmp.eq.s32.totalorder %v240_v24, %v2852_v21 }
  0xf5   :  { %v1902_v25 = vsel %vm241_vm2, 1.0, %v2642_v18 }
  0xf6   :  { %v244_v33 = vadd.f32 %v1902_v25, %v230_v26 }
  0xf8   :  { %v254_v31 = vpop.permute.xlu1 %253 }
  0xf9   :  { %vm255_vm6 = vcmp.eq.s32.totalorder %v254_v31, %v2852_v21 }
  0xfa   :  { %v1904_v34 = vsel %vm255_vm6, 1.0, %v2642_v18  ;;  %vm1858_vm6 = vcmask 0  }
  0xfb   :  { %v258_v37 = vadd.f32 %v1904_v34, %v244_v33 }
  0xfd   :  { %v272_v40 = vadd.f32 %v1906_v35, %v258_v37  ;;  %v163_v42 = vpop.permute.xlu1 %162 }
  0xfe   :  { %vm164_vm10 = vcmp.eq.s32.totalorder %v163_v42, %v2852_v21 }
  0xff   :  { %v290_v45 = vsel %vm288_vm8, %v272_v40, 0  ;;  %v1891_v51 = vsel %vm164_vm10, 1.0, %v2642_v18 }
 0x100   :  { %v2900_v47 = vand.u32 4294901760, %v290_v45  ;;  %v167_v58 = vadd.f32 %v1891_v51, %v153_v52 }
 0x102   :  { %v2905_v49 = vsub.f32 %v290_v45, %v2900_v47  ;;  %v177_v50 = vpop.permute.xlu1 %176  ;;  %2064 = vmatmul.mubr.f32.vlgmr.msra.gmra.mrb[0].mxu0 %v2900_v47 }
 0x103   :  { %vm178_vm11 = vcmp.eq.s32.totalorder %v177_v50, %v2852_v21  ;;  %2312 = vmatpush3.bf16.msra.mxu0 %v2804_v2  ;;  %2082 = vmatprep.mubr.msk.f32.mxu0 %vm2641_vm0, %v2642_v18 }
 0x104   :  { %2313 = vmatprep.subr.bf16.mxu0 %v2639_v44  ;;  %v367_v54 = vand.u32 4294901760, %v2905_v49  ;;  %v1893_v55 = vsel %vm178_vm11, 1.0, %v2642_v18 }
 0x105   :  { %v181_v62 = vadd.f32 %v1893_v55, %v167_v58 }
 0x106   :  { %v368_v59 = vsub.f32 %v2905_v49, %v367_v54 }
 0x107   :  { %2315 = vmatpush3.bf16.msra.mxu0 %v2817_v19  ;;  %v191_v60 = vpop.permute.xlu1 %190 }
 0x108   :  { %vm192_vm12 = vcmp.eq.s32.totalorder %v191_v60, %v2852_v21  ;;  %2316 = vmatprep.subr.bf16.mxu0 %v2639_v44  ;;  %v369_v63 = vand.u32 4294901760, %v368_v59 }
 0x109   :  { %v1895_v0 = vsel %vm192_vm12, 1.0, %v2642_v18 }
 0x10a   :  { %v195_v1 = vadd.f32 %v1895_v0, %v181_v62  ;;  %2045 = vmatmul.mubr.f32.vlgmr.msra.gmra.mrb[0].mxu1 %v369_v63 }
 0x10b   :  { %2318 = vmatpush3.bf16.msra.mxu0 %v2824_v22  ;;  %2360 = vmatpush3.bf16.msra.mxu1 %v2769_v53 }
 0x10c   :  { %v219_v4 = vpop.permute.xlu1 %218  ;;  %2319 = vmatprep.subr.bf16.mxu0 %v2639_v44  ;;  %2361 = vmatprep.subr.bf16.mxu1 %v2639_v44  ;;  %v209_v5 = vadd.f32 %v1897_v3, %v195_v1 }
 0x10d   :  { %vm220_vm14 = vcmp.eq.s32.totalorder %v219_v4, %v2852_v21  ;;  %2158 = vmatprep.mubr.msk.f32.mxu1 %vm2641_vm0, %v2642_v18 }
 0x10e   :  { %v1899_v7 = vsel %vm220_vm14, 1.0, %v2642_v18 }
 0x10f   :  { %2321 = vmatpush3.bf16.msra.mxu0 %v2828_v8  ;;  %2363 = vmatpush3.bf16.msra.mxu1 %v2780_v61  ;;  %v223_v14 = vadd.f32 %v1899_v7, %v209_v5 }
 0x110   :  { %2322 = vmatprep.subr.bf16.mxu0 %v2639_v44  ;;  %2364 = vmatprep.subr.bf16.mxu1 %v2639_v44 }
 0x111   :  { %v233_v24 = vpop.permute.xlu1 %232 }
 0x112   :  { %vm234_vm15 = vcmp.eq.s32.totalorder %v233_v24, %v2852_v21  ;;  %2083 = vmatmul.mubr.f32.vlgmr.msra.gmra.mrb[0].mxu0 %v2905_v49 }
 0x113   :  { %v1901_v27 = vsel %vm234_vm15, 1.0, %v2642_v18  ;;  %2324 = vmatpush3.bf16.msra.mxu0 %v2769_v53  ;;  %2101 = vmatprep.mubr.msk.f32.mxu0 %vm2641_vm0, %v2642_v18 }
 0x114   :  { %v237_v11 = vadd.f32 %v1901_v27, %v223_v14  ;;  %2325 = vmatprep.subr.bf16.mxu0 %v2639_v44  ;;  %2366 = vmatpush3.bf16.msra.mxu1 %v2790_v16 }
 0x115   :  { %2367 = vmatprep.subr.bf16.mxu1 %v2639_v44 }
 0x116   :  { %v261_v29 = vpop.permute.xlu1 %260  ;;  %v251_v25 = vadd.f32 %v1903_v20, %v237_v11 }
 0x117   :  { %vm262_vm2 = vcmp.eq.s32.totalorder %v261_v29, %v2852_v21  ;;  %2327 = vmatpush3.bf16.msra.mxu0 %v2780_v61 }
 0x118   :  { %2328 = vmatprep.subr.bf16.mxu0 %v2639_v44  ;;  %2369 = vmatpush3.bf16.msra.mxu1 %v2811_v9  ;;  %v1905_v26 = vsel %vm262_vm2, 1.0, %v2642_v18 }
 0x119   :  { %2370 = vmatprep.subr.bf16.mxu1 %v2639_v44  ;;  %v265_v31 = vadd.f32 %v1905_v26, %v251_v25 }
 0x11b   :  { %2330 = vmatpush3.bf16.msra.mxu0 %v2790_v16  ;;  %v275_v30 = vpop.permute.xlu1 %274 }
 0x11c   :  { %vm276_vm3 = vcmp.eq.s32.totalorder %v275_v30, %v2852_v21  ;;  %2331 = vmatprep.subr.bf16.mxu0 %v2639_v44 }
 0x11d   :  { %v1907_v32 = vsel %vm276_vm3, 1.0, %v2642_v18 }
 0x11e   :  { %v279_v33 = vadd.f32 %v1907_v32, %v265_v31 }
 0x11f   :  { %2333 = vmatpush3.bf16.msra.mxu0 %v2811_v9 }
 0x120   :  { %v830_v34 = vsel %vm288_vm8, %v279_v33, 0  ;;  %2334 = vmatprep.subr.bf16.mxu0 %v2639_v44 }
 0x121   :  { %v2959_v35 = vand.u32 4294901760, %v830_v34 }
 0x122   :  { %2102 = vmatmul.mubr.f32.vlgmr.msra.gmra.mrb[0].mxu0 %v367_v54 }
 0x123   :  { %v906_v36 = vsub.f32 %v830_v34, %v2959_v35  ;;  %2336 = vmatpush3.bf16.msra.mxu0 %v2839_v10  ;;  %2120 = vmatprep.mubr.msk.f32.mxu0 %vm2641_vm0, %v2642_v18 }
 0x124   :  { %2337 = vmatprep.subr.bf16.mxu0 %v2639_v44 }
 0x125   :  { %v907_v37 = vand.u32 4294901760, %v906_v36 }
 0x127   :  { %2339 = vmatpush3.bf16.msra.mxu0 %v2845_v12  ;;  %v908_v38 = vsub.f32 %v906_v36, %v907_v37 }
 0x128   :  { %2340 = vmatprep.subr.bf16.mxu0 %v2639_v44 }
 0x129   :  { %v909_v39 = vand.u32 4294901760, %v908_v38 }
 0x12b   :  { %2342 = vmatpush3.bf16.msra.mxu0 %v2847_v15  ;;  %2159 = vmatmul.mubr.f32.vlgmr.msra.gmra.mrb[2].mxu1 %v909_v39 }
 0x12c   :  { %2372 = vmatpush3.bf16.msra.mxu1 %v2754_v41  ;;  %2343 = vmatprep.subr.bf16.mxu0 %v2639_v44 }
 0x12d   :  { %2373 = vmatprep.subr.bf16.mxu1 %v2639_v44  ;;  %2177 = vmatprep.mubr.msk.f32.mxu1 %vm2641_vm0, %v2642_v18 }
 0x12f   :  { %2345 = vmatpush3.bf16.msra.mxu0 %v2849_v23 }
 0x130   :  { %2375 = vmatpush3.bf16.msra.mxu1 %v2775_v56  ;;  %2346 = vmatprep.subr.bf16.mxu0 %v2639_v44 }
 0x131   :  { %2376 = vmatprep.subr.bf16.mxu1 %v2639_v44 }
 0x132   :  { %2121 = vmatmul.mubr.f32.vlgmr.msra.gmra.mrb[0].mxu0 %v2900_v47 }
 0x133   :  { %2348 = vmatpush3.bf16.msra.mxu0 %v2769_v53  ;;  %2139 = vmatprep.mubr.msk.f32.mxu0 %vm2641_vm0, %v2642_v18 }
 0x134   :  { %2378 = vmatpush3.bf16.msra.mxu1 %v2786_v6  ;;  %2349 = vmatprep.subr.bf16.mxu0 %v2639_v44 }
 0x135   :  { %2379 = vmatprep.subr.bf16.mxu1 %v2639_v44 }
 0x137   :  { %2351 = vmatpush3.bf16.msra.mxu0 %v2780_v61 }
 0x138   :  { %2381 = vmatpush3.bf16.msra.mxu1 %v2794_v17  ;;  %2352 = vmatprep.subr.bf16.mxu0 %v2639_v44 }
 0x139   :  { %2382 = vmatprep.subr.bf16.mxu1 %v2639_v44 }
 0x13b   :  { %2354 = vmatpush3.bf16.msra.mxu0 %v2790_v16  ;;  %2178 = vmatmul.mubr.f32.vlgmr.msra.gmra.mrb[2].mxu1 %v2959_v35 }
 0x13c   :  { %2384 = vmatpush3.bf16.msra.mxu1 %v2804_v2  ;;  %2355 = vmatprep.subr.bf16.mxu0 %v2639_v44 }
 0x13d   :  { %2385 = vmatprep.subr.bf16.mxu1 %v2639_v44  ;;  %2196 = vmatprep.mubr.msk.f32.mxu1 %vm2641_vm0, %v2642_v18 }
 0x13f   :  { %2357 = vmatpush3.bf16.msra.mxu0 %v2811_v9 }
 0x140   :  { %2387 = vmatpush3.bf16.msra.mxu1 %v2817_v19  ;;  %2256 = vmatprep.subr.mxu0 %v2642_v18 }
 0x141   :  { %2388 = vmatprep.subr.bf16.mxu1 %v2639_v44 }
 0x142   :  { %2140 = vmatmul.mubr.f32.vlgmr.msra.gmra.mrb[0].mxu0 %v2900_v47 }
 0x143   :  { %2258 = vmatprep.mubr.msk.f32.mxu0 %vm2641_vm0, %v2642_v18 }
 0x144   :  { %2390 = vmatpush3.bf16.msra.mxu1 %v2824_v22 }
 0x145   :  { %2391 = vmatprep.subr.bf16.mxu1 %v2639_v44 }
 0x148   :  { %2393 = vmatpush3.bf16.msra.mxu1 %v2828_v8 }
 0x149   :  { %2394 = vmatprep.subr.bf16.mxu1 %v2639_v44 }
 0x14b   :  { %2197 = vmatmul.mubr.f32.vlgmr.msra.gmra.mrb[2].mxu1 %v906_v36 }
 0x14c   :  { %2396 = vmatpush3.bf16.msra.mxu1 %v2769_v53  ;;  %2215 = vmatprep.mubr.msk.f32.mxu1 %vm2641_vm0, %v2642_v18 }
 0x14d   :  { %2397 = vmatprep.subr.bf16.mxu1 %v2639_v44 }
 0x150   :  { %2399 = vmatpush3.bf16.msra.mxu1 %v2780_v61 }
 0x151   :  { %2400 = vmatprep.subr.bf16.mxu1 %v2639_v44 }
 0x154   :  { %2402 = vmatpush3.bf16.msra.mxu1 %v2790_v16 }
 0x155   :  { %2403 = vmatprep.subr.bf16.mxu1 %v2639_v44 }
 0x158   :  { %2405 = vmatpush3.bf16.msra.mxu1 %v2811_v9 }
 0x159   :  { %2406 = vmatprep.subr.bf16.mxu1 %v2639_v44 }
 0x15b   :  { %2216 = vmatmul.mubr.f32.vlgmr.msra.gmra.mrb[2].mxu1 %v907_v37 }
 0x15c   :  { %2408 = vmatpush3.bf16.msra.mxu1 %v2839_v10  ;;  %2234 = vmatprep.mubr.msk.f32.mxu1 %vm2641_vm0, %v2642_v18 }
 0x15d   :  { %2409 = vmatprep.subr.bf16.mxu1 %v2639_v44 }
 0x160   :  { %2411 = vmatpush3.bf16.msra.mxu1 %v2845_v12 }
 0x161   :  { %2412 = vmatprep.subr.bf16.mxu1 %v2639_v44 }
 0x164   :  { %2414 = vmatpush3.bf16.msra.mxu1 %v2847_v15 }
 0x165   :  { %2415 = vmatprep.subr.bf16.mxu1 %v2639_v44 }
 0x168   :  { %2417 = vmatpush3.bf16.msra.mxu1 %v2849_v23 }
 0x169   :  { %2418 = vmatprep.subr.bf16.mxu1 %v2639_v44 }
 0x16b   :  { %2235 = vmatmul.mubr.f32.vlgmr.msra.gmra.mrb[2].mxu1 %v2959_v35 }
 0x16c   :  { %2420 = vmatpush3.bf16.msra.mxu1 %v2769_v53  ;;  %2253 = vmatprep.mubr.msk.f32.mxu1 %vm2641_vm0, %v2642_v18 }
 0x16d   :  { %2421 = vmatprep.subr.bf16.mxu1 %v2639_v44 }
 0x170   :  { %2423 = vmatpush3.bf16.msra.mxu1 %v2780_v61 }
 0x171   :  { %2424 = vmatprep.subr.bf16.mxu1 %v2639_v44 }
 0x174   :  { %2426 = vmatpush3.bf16.msra.mxu1 %v2790_v16 }
 0x175   :  { %2427 = vmatprep.subr.bf16.mxu1 %v2639_v44 }
 0x178   :  { %2429 = vmatpush3.bf16.msra.mxu1 %v2811_v9 }
 0x17b   :  { %2254 = vmatmul.mubr.f32.vlgmr.msra.gmra.mrb[2].mxu1 %v2959_v35 }
 0x1dd   :  { %v371_v41 = vpop.f32.mrb[0].mxu1 }
 0x1de   :  { %v2046_v56 = vpop.f32.mrb[1].mxu1 }
 0x215   :  { %v825_v53 = vpop.f32.mrb[0].mxu0 }
 0x216   :  { %v2430_v6 = vadd.f32 %v825_v53, %v371_v41  ;;  %v2141_v17 = vpop.f32.mrb[1].mxu0 }
 0x218   :  { %v1369_v2 = vmul.f32 %v2430_v6, %v2430_v6 }
 0x21a   :  { %1370 = vadd.xlane.f32.xlu0 %v1369_v2 }
 0x24e   :  { %v1365_v19 = vpop.f32.mrb[2].mxu1 }
 0x24f   :  { %v2255_v22 = vpop.f32.mrb[3].mxu1  ;;  %v1374_v61 = vmul.f32 %v1365_v19, %v1365_v19 }
 0x251   :  { %1375 = vadd.xlane.f32.xlu1 %v1374_v61 }
 0x2a7   :  { %v1371_v8 = vpop.xlane.xlu0 %1370 }
 0x2a8   :  { %v1372_v10 = vmax.f32 %v1371_v8, 2.56e-06 }
 0x2aa   :  { %2517 = vrsqrt.f32 %v1372_v10 }
 0x2b4   :  { %v2518_v16 = vpop.eup %2517 }
 0x2b5   :  { %v1379_v44 = vmul.f32 20.0, %v2518_v16 }
 0x2b7   :  { %v1380_v12 = vmul.f32 %v2430_v6, %v1379_v44 }
 0x2b9   :  { %v1448_v23 = vand.u32 4294901760, %v1380_v12 }
 0x2bb   :  { %v1449_v40 = vsub.f32 %v1380_v12, %v1448_v23 }
 0x2bd   :  { %v1450_v42 = vand.u32 4294901760, %v1449_v40 }
 0x2bf   :  { %v1451_v46 = vsub.f32 %v1449_v40, %v1450_v42 }
 0x2c1   :  { %v1452_v50 = vand.u32 4294901760, %v1451_v46 }
 0x2de   :  { %v1376_v9 = vpop.xlane.xlu1 %1375 }
 0x2df   :  { %v1377_v15 = vmax.f32 %v1376_v9, 2.56e-06 }
 0x2e1   :  { %2519 = vrsqrt.f32 %v1377_v15 }
 0x2eb   :  { %v2520_v43 = vpop.eup %2519 }
 0x2ec   :  { %v1381_v45 = vmul.f32 %v2520_v43, %v1365_v19 }
 0x2ee   :  { %v1383_v47 = vand.u32 4294901760, %v1381_v45  ;;  %v1828_v48 = vmul.f32 %v1381_v45, %v1380_v12 }
 0x2f0   :  { %2257 = vmatpush3.xpose.msra.mxu0 %v1383_v47  ;;  %1829 = vadd.xlane.f32.xlu1 %v1828_v48  ;;  %v1460_v49 = vsub.f32 %v1381_v45, %v1383_v47 }
 0x2f1   :  { %2261 = vmatprep.subr.mxu0 %v2642_v18 }
 0x2f2   :  { %v1461_v51 = vand.u32 4294901760, %v1460_v49 }
 0x2f3   :  { %2259 = vmatmul.mubr.f32.vlgmr.msra.gmra.mrb[2].mxu0 %v1452_v50 }
 0x2f4   :  { %v1462_v52 = vsub.f32 %v1460_v49, %v1461_v51  ;;  %2263 = vmatprep.mubr.msk.f32.mxu0 %vm2641_vm0, %v2642_v18 }
 0x2f6   :  { %v1463_v54 = vand.u32 4294901760, %v1462_v52 }
 0x2f8   :  { %2262 = vmatpush3.xpose.msra.mxu0 %v1463_v54 }
 0x2f9   :  { %2266 = vmatprep.subr.mxu0 %v2642_v18 }
 0x2fb   :  { %2264 = vmatmul.mubr.f32.vlgmr.msra.gmra.mrb[2].mxu0 %v1448_v23 }
 0x2fc   :  { %2267 = vmatpush3.xpose.msra.mxu0 %v1460_v49  ;;  %2268 = vmatprep.mubr.msk.f32.mxu0 %vm2641_vm0, %v2642_v18 }
 0x2fd   :  { %2271 = vmatprep.subr.mxu0 %v2642_v18 }
 0x303   :  { %2269 = vmatmul.mubr.f32.vlgmr.msra.gmra.mrb[2].mxu0 %v1449_v40 }
 0x304   :  { %2272 = vmatpush3.xpose.msra.mxu0 %v1383_v47  ;;  %2273 = vmatprep.mubr.msk.f32.mxu0 %vm2641_vm0, %v2642_v18 }
 0x305   :  { %2276 = vmatprep.subr.mxu0 %v2642_v18 }
 0x30b   :  { %2274 = vmatmul.mubr.f32.vlgmr.msra.gmra.mrb[2].mxu0 %v1450_v42 }
 0x30c   :  { %2277 = vmatpush3.xpose.msra.mxu0 %v1461_v51  ;;  %2278 = vmatprep.mubr.msk.f32.mxu0 %vm2641_vm0, %v2642_v18 }
 0x30d   :  { %2281 = vmatprep.subr.mxu0 %v2642_v18 }
 0x313   :  { %2279 = vmatmul.mubr.f32.vlgmr.msra.gmra.mrb[2].mxu0 %v1448_v23 }
 0x314   :  { %2282 = vmatpush3.xpose.msra.mxu0 %v1383_v47  ;;  %2283 = vmatprep.mubr.msk.f32.mxu0 %vm2641_vm0, %v2642_v18  ;;  %v1848_v18 = vshrl.u32 %v52_v28, 7 }
 0x316   :  { %vm1849_vm0 = vcmp.lt.s32.totalorder %v1848_v18, 4 }
 0x31b   :  { %2284 = vmatmul.mubr.f32.vlgmr.msra.gmra.mrb[2].mxu0 %v1448_v23 }
 0x37d   :  { %v1830_v7 = vpop.xlane.xlu1 %1829 }
 0x3ee   :  { %v1824_v55 = vpop.f32.mrb[2].mxu0 }
 0x3ef   :  { %v1832_v57 = vsel %vm1831_vm4, %v1824_v55, -1e+30  ;;  %v2285_v58 = vpop.f32.mrb[3].mxu0 }
 0x3f0   :  { %v1834_v59 = vsel %vm1833_vm5, %v1832_v57, -inf }
 0x3f1   :  { %1835 = vmax.xlane.f32.xlu0 %v1834_v59 }
 0x47e   :  { %v1836_v60 = vpop.xlane.xlu0 %1835 }
 0x47f   :  { %v1837_v62 = vsub.f32 %v1832_v57, %v1836_v60 }
 0x481   :  { %v1838_v63 = vmul.f32 1.442695, %v1837_v62 }
 0x483   :  { %2521 = vpow2.f32 %v1838_v63 }
 0x48d   :  { %v2522_v0 = vpop.eup %2521 }
 0x48e   :  { %v1840_v1 = vsel %vm1833_vm5, %v2522_v0, 0.0 }
 0x48f   :  { %1841 = vadd.xlane.f32.xlu0 %v1840_v1 }
 0x51c   :  { %v1842_v3 = vpop.xlane.xlu0 %1841 }
 0x51d   :  { %2523 = vlog2.f32 %v1842_v3 }
 0x527   :  { %v2524_v4 = vpop.eup %2523 }
 0x528   :  { %v1844_v5 = vmul.f32 0.6931472, %v2524_v4 }
 0x52a   :  { %v1845_v21 = vadd.f32 %v1844_v5, %v1836_v60 }
 0x52c   :  { %v1846_v13 = vsub.f32 %v1845_v21, %v1830_v7 }
 0x52e   :  { %v1850_v24 = vsel %vm1849_vm0, %v1846_v13, 0.0 }
 0x52f   :  { %v1851_v14 = vrot.slane %v1850_v24, 4 }
 0x531   :  { %v1852_v27 = vadd.f32 %v1851_v14, %v1850_v24 }
 0x533   :  { %v1853_v11 = vrot.slane %v1852_v27, 2 }
 0x535   :  { %v1854_v20 = vadd.f32 %v1853_v11, %v1852_v27 }
 0x537   :  { %v1855_v29 = vrot.slane %v1854_v20, 1 }
 0x539   :  { %v1856_v25 = vadd.f32 %v1855_v29, %v1854_v20 }
 0x53b   :  { %v1857_v26 = vmul.f32 0.25, %v1856_v25 }
 0x53d   :  { %1859 = vst.msk [vmem:[#allocation8] sm:$0x1] %vm1858_vm6, %v1857_v26 }
 0x53e   :  { %2602 = shalt.err (!%p2599_p0)
}
 0x53f   :  { %s2603_s26 = scalar_lea.hbm %s3070_s3, 16 }
 0x540   :  { %p2604_p1 = scmp.ne.s32.totalorder %s3070_s3, %s2603_s26  ;;  %p2607_p2 = scmp.lt.u32.totalorder %s2603_s26, %s3070_s3 }
 0x542   :  { %p2609_p3 = pnand %p2607_p2, %p2604_p1 }
 0x544   :  { %2612 = shalt.err (!%p2609_p3)
}
 0x545   :  { %1869 = dma.vmem_to_hbm [thread:$0]  %s1867_s21, 16, %s3070_s3, [#allocation4]  }
 0x546   :  { %2617 = dma.done.wait [#allocation4], 16  }
 0x547   :  { %2618 = vsyncadd [#allocation4], 4294967280 }
 0x548   :  { %1873 = vsyncpa [#allocation3], 1 }
 0x549   :  { %1874 = vsyncpa [#allocation6], 1 }
 0x54a   :  { %1875 = vsyncpa [#allocation4], 1 }

</bundles_post_ra>
